<compile_context>
chip_gen: v7x
topology: tpu7x:2x2x1
jax: 0.10.0
libtpu: 0.0.40
codegen_flags: <defaults>
</compile_context>

<pallas_src>
import functools

import jax
import jax.numpy as jnp
from jax.experimental import pallas as pl
from jax.experimental.pallas import tpu as pltpu


# ----------------------------------------------------------------------------
# Fused kernel: per-node scores (MXU) -> one-hot gather (MXU) -> LeakyReLU ->
#               block mean -> softmax.  One grid step per group.
# ----------------------------------------------------------------------------
def _attentive_group_kernel(x_ref, a_ref, idxk_ref, idxv_ref, o_ref, *,
                            K, P, H, M, D2, slop):
    # Per-node key/value scores: one small MXU matmul.  Recomputed per grid
    # step (it is tiny) so the group axis stays embarrassingly parallel.
    x = x_ref[...].astype(jnp.float32)                       # [N, C]
    a = a_ref[...].astype(jnp.float32)                       # [C, 2H]
    s = jnp.dot(x, a, preferred_element_type=jnp.float32)    # [N, 2H]
    n = s.shape[0]
    kp = K * P

    # One-hot gather (MXU) of this group's key / value node scores.
    idx_k = idxk_ref[0]                                      # [K*P, 1] int32
    idx_v = idxv_ref[0]                                      # [K*P, 1] int32
    n_iota = jax.lax.broadcasted_iota(jnp.int32, (kp, n), 1)
    oh_k = (n_iota == idx_k).astype(jnp.float32)             # [K*P, N]
    oh_v = (n_iota == idx_v).astype(jnp.float32)             # [K*P, N]
    g_k = jnp.dot(oh_k, s, preferred_element_type=jnp.float32)[:, :H]  # key scores   [K*P, H]
    g_v = jnp.dot(oh_v, s, preferred_element_type=jnp.float32)[:, H:]  # value scores [K*P, H]

    # score[a, b, p, h] = LeakyReLU(key_score[a, p, h] + value_score[b, p, h])
    # (row-major (a, b, p) order == torch's cat/repeat row order)
    sc = g_k.reshape(K, 1, P, H) + g_v.reshape(1, K, P, H)   # [K, K, P, H]
    sc = jnp.where(sc >= 0, sc, slop * sc)

    # == att_score.view(2K, M, H).mean(dim=1)
    avg = jnp.mean(sc.reshape(2 * K, M, H), axis=1)          # [2K, H]

    # == avg_score.view(K, K, 2H/K); softmax over dim=1
    av = avg.reshape(K, K, D2)
    mx = jnp.max(av, axis=1, keepdims=True)
    e = jnp.exp(av - mx)
    denom = jnp.sum(e, axis=1, keepdims=True)
    proba = e * pl.reciprocal(denom, approx=True)            # divide on the EUP slot
    o_ref[0] = proba.astype(o_ref.dtype)


def _grouped_attention(x, a_fold, idx_key, idx_val, *, K, P, H, slop):
    """x: [N, C]; a_fold: [C, 2H]; idx_key/idx_val: [G, K*P, 1] int32."""
    G = idx_key.shape[0]
    N, C = x.shape
    assert (K * K * P) % (2 * K) == 0, "torch .view(2K, -1, H) needs 2K | K*K*P"
    M = (K * K * P) // (2 * K)
    assert (2 * H) % K == 0, "torch .view(K, K, -1) needs K | 2H"
    D2 = (2 * H) // K

    kernel = functools.partial(
        _attentive_group_kernel, K=K, P=P, H=H, M=M, D2=D2, slop=slop)

    # TODO(synk): for large N, tile x over a second grid axis / DMA-gather rows
    # instead of keeping the whole [N, C] block and [N, 2H] scores resident.
    return pl.pallas_call(
        kernel,
        out_shape=jax.ShapeDtypeStruct((G, K, K, D2), x.dtype),
        grid=(G,),
        in_specs=[
            pl.BlockSpec((N, C), lambda g: (0, 0)),          # x: resident, fetched once
            pl.BlockSpec((C, 2 * H), lambda g: (0, 0)),      # folded att matrix
            pl.BlockSpec((1, K * P, 1), lambda g: (g, 0, 0)),  # key node ids (per group)
            pl.BlockSpec((1, K * P, 1), lambda g: (g, 0, 0)),  # value node ids (per group)
        ],
        out_specs=pl.BlockSpec((1, K, K, D2), lambda g: (g, 0, 0, 0)),
        compiler_params=pltpu.CompilerParams(
            dimension_semantics=("parallel",),               # groups shard across TCs
            vmem_limit_bytes=32 * 1024 * 1024,
        ),
    )(x, a_fold, idx_key, idx_val)


# ----------------------------------------------------------------------------
# Parameter fold + index packing (tiny, parameter-/metadata-only glue).
# ----------------------------------------------------------------------------
def _fold_attention_params(att_lin_weight, att, heads, out_channels):
    """Fold nn.Linear weight [H*C, C] and att [1, H, 2C] into A: [C, 2H].

    x @ A reproduces (att_lin(x).view(-1,H,C) * att[..., :C]).sum(-1) in
    columns [:H] and the value-side product in columns [H:].
    (Could be hoisted to parameter init; it is a tiny parameter-only einsum.)
    """
    H, C = heads, out_channels
    w3 = att_lin_weight.reshape(H, C, C)                     # [H, C_out, C_in]
    attk = att[0, :, :C]                                     # [H, C_out]
    attv = att[0, :, C:]                                     # [H, C_out]
    a_key = jnp.einsum("hcd,hc->dh", w3, attk)               # [C_in, H]
    a_val = jnp.einsum("hcd,hc->dh", w3, attv)               # [C_in, H]
    return jnp.concatenate([a_key, a_val], axis=1)           # [C_in, 2H]


def _pack_group_indices(node_idxes):
    """node_idxes: list of groups; each group is a list of K (l0, l1) pairs."""
    packed = []
    for idxes in node_idxes:
        K = len(idxes)
        l0s = [jnp.asarray(l0).astype(jnp.int32).reshape(-1) for (l0, _) in idxes]
        l1s = [jnp.asarray(l1).astype(jnp.int32).reshape(-1) for (_, l1) in idxes]
        P = int(l0s[0].shape[0])
        for a in range(K):
            assert int(l0s[a].shape[0]) == P and int(l1s[a].shape[0]) == P, \
                "ragged (l0, l1) index lists are not supported"
        idx_val = jnp.concatenate(l0s).reshape(K * P, 1)     # value path uses l[0]
        idx_key = jnp.concatenate(l1s).reshape(K * P, 1)     # key   path uses l[1]
        packed.append((K, P, idx_key, idx_val))
    return packed


# ----------------------------------------------------------------------------
# Full forward pass
# ----------------------------------------------------------------------------
def attentive_bp_net_forward(params, x, edge_index, node_idxes, *, heads,
                             out_channels, slop=0.2):
    # edge_index is unused in the reference forward; accepted but ignored.
    del edge_index
    a_fold = _fold_attention_params(
        params["att_lin_weight"], params["att"], heads, out_channels)

    groups = _pack_group_indices(node_idxes)

    # Batch all groups that share (K, P) into one gridded pallas_call.
    by_sig = {}
    for gi, (K, P, ik, iv) in enumerate(groups):
        by_sig.setdefault((K, P), []).append((gi, ik, iv))

    results = [None] * len(groups)
    for (K, P), items in by_sig.items():
        idx_key = jnp.stack([ik for (_, ik, _) in items])    # [G, K*P, 1]
        idx_val = jnp.stack([iv for (_, _, iv) in items])    # [G, K*P, 1]
        out = _grouped_attention(x, a_fold, idx_key, idx_val,
                                 K=K, P=P, H=heads, slop=slop)
        for slot, (gi, _, _) in enumerate(items):
            results[gi] = out[slot]

    # TODO(synk): reference forward() has no return statement (returns None);
    # we return the computed per-group probability list it builds.
    return results


# ----------------------------------------------------------------------------
# Pure-JAX literal reference (for correctness checking only).
# ----------------------------------------------------------------------------
def _reference_forward(params, x, node_idxes, heads, out_channels, slop):
    xh = (x @ params["att_lin_weight"].T).reshape(-1, heads, out_channels)
    att = params["att"]
    res = []
    for idxes in node_idxes:
        K = len(idxes)
        value = jnp.concatenate([xh[jnp.asarray(l0)] for (l0, _) in idxes], axis=0)
        key = jnp.concatenate(
            [jnp.tile(xh[jnp.asarray(l1)], (K, 1, 1)) for (_, l1) in idxes], axis=0)
        value = jnp.tile(value, (K, 1, 1))
        inp = jnp.concatenate([key, value], axis=-1)
        score = jnp.sum(inp * att, axis=-1)
        score = jnp.where(score >= 0, score, slop * score)
        avg = score.reshape(2 * K, -1, heads).mean(axis=1)
        avg = avg.reshape(K, K, -1)
        res.append(jax.nn.softmax(avg, axis=1))
    return res


if __name__ == "__main__":
    C = 32   # out_channels
    H = 4    # heads
    N = 16   # number of nodes
    slop = 0.2

    key0 = jax.random.PRNGKey(0)
    kx, kw, ka = jax.random.split(key0, 3)

    x = jax.random.normal(kx, (N, C), dtype=jnp.float32)
    params = {
        # nn.Linear(C, H*C, bias=False).weight -> [H*C, C]
        "att_lin_weight": 0.1 * jax.random.normal(kw, (H * C, C), dtype=jnp.float32),
        # nn.Parameter(torch.Tensor(1, H, 2C))
        "att": 0.1 * jax.random.normal(ka, (1, H, 2 * C), dtype=jnp.float32),
    }
    edge_index = jnp.zeros((2, 1), dtype=jnp.int32)  # unused by forward

    # node_idxes: 2 groups, each with K=2 entries l = (l[0], l[1]) of P=4 node ids.
    node_idxes = [
        [
            (jnp.array([0, 1, 2, 3]), jnp.array([4, 5, 6, 7])),
            (jnp.array([8, 9, 10, 11]), jnp.array([12, 13, 14, 15])),
        ],
        [
            (jnp.array([1, 3, 5, 7]), jnp.array([0, 2, 4, 6])),
            (jnp.array([9, 11, 13, 15]), jnp.array([8, 10, 12, 14])),
        ],
    ]

    res = attentive_bp_net_forward(
        params, x, edge_index, node_idxes, heads=H, out_channels=C, slop=slop)
    ref = _reference_forward(params, x, node_idxes, H, C, slop)

    for r, rr in zip(res, ref):
        jax.block_until_ready(r)
        assert r.shape == (2, 2, 4)
        # softmax over dim=1 sums to ~1 (approx reciprocal -> loose tolerance)
        assert bool(jnp.allclose(jnp.sum(r, axis=1), 1.0, atol=5e-3))
        # matches the literal (un-folded) reference
        assert bool(jnp.allclose(r, rr, rtol=5e-3, atol=1e-5))

    print("KERNEL_OK")
</pallas_src>

<mosaic_0001>
module attributes {stable_mosaic.version = 11 : i64} {
  func.func @_attentive_group_kernel(%arg0: i32, %arg1: memref<16x32xf32, #tpu.memory_space<vmem>>, %arg2: memref<32x8xf32, #tpu.memory_space<vmem>>, %arg3: memref<1x8x1xi32, #tpu.memory_space<vmem>>, %arg4: memref<1x8x1xi32, #tpu.memory_space<vmem>>, %arg5: memref<1x2x2x4xf32, #tpu.memory_space<vmem>>) attributes {dimension_semantics = [#tpu.dimension_semantics<parallel>], iteration_bounds = array<i64: 2>, scalar_prefetch = 0 : i64, scratch_operands = 0 : i64, tpu.core_type = #tpu.core_type<tc>, window_params = [{pipeline_mode = #tpu.pipeline_mode<synchronous>, transform_indices = @transform_0, window_bounds = array<i64: 16, 32>}, {pipeline_mode = #tpu.pipeline_mode<synchronous>, transform_indices = @transform_1, window_bounds = array<i64: 32, 8>}, {transform_indices = @transform_2, window_bounds = array<i64: 1, 8, 1>}, {transform_indices = @transform_3, window_bounds = array<i64: 1, 8, 1>}, {transform_indices = @transform_4, window_bounds = array<i64: 1, 2, 2, 4>}]} {
    %c0 = arith.constant 0 : index
    %c0_0 = arith.constant 0 : index
    %0 = vector.load %arg1[%c0, %c0_0] : memref<16x32xf32, #tpu.memory_space<vmem>>, vector<16x32xf32>
    %c0_1 = arith.constant 0 : index
    %c0_2 = arith.constant 0 : index
    %1 = vector.load %arg2[%c0_1, %c0_2] : memref<32x8xf32, #tpu.memory_space<vmem>>, vector<32x8xf32>
    %cst = arith.constant dense<0.000000e+00> : vector<16x8xf32>
    %2 = tpu.matmul %0, %1, %cst {dimension_numbers = #tpu.dot_dimension_numbers<[1], [0], [0], [1], [0, 0, 1, 1], [], []>} : vector<16x32xf32>, vector<32x8xf32>, vector<16x8xf32> -> vector<16x8xf32>
    %c0_3 = arith.constant 0 : index
    %c0_4 = arith.constant 0 : index
    %c0_5 = arith.constant 0 : index
    %3 = vector.load %arg3[%c0_3, %c0_4, %c0_5] : memref<1x8x1xi32, #tpu.memory_space<vmem>>, vector<1x8x1xi32>
    %4 = vector.shape_cast %3 : vector<1x8x1xi32> to vector<8x1xi32>
    %c0_6 = arith.constant 0 : index
    %c0_7 = arith.constant 0 : index
    %c0_8 = arith.constant 0 : index
    %5 = vector.load %arg4[%c0_6, %c0_7, %c0_8] : memref<1x8x1xi32, #tpu.memory_space<vmem>>, vector<1x8x1xi32>
    %6 = vector.shape_cast %5 : vector<1x8x1xi32> to vector<8x1xi32>
    %7 = tpu.iota {dimensions = array<i32: 1>} : vector<8x16xi32>
    %8 = vector.broadcast %4 : vector<8x1xi32> to vector<8x16xi32>
    %9 = arith.cmpi eq, %7, %8 : vector<8x16xi32>
    %10 = arith.extui %9 : vector<8x16xi1> to vector<8x16xi32>
    %11 = arith.sitofp %10 : vector<8x16xi32> to vector<8x16xf32>
    %12 = vector.broadcast %6 : vector<8x1xi32> to vector<8x16xi32>
    %13 = arith.cmpi eq, %7, %12 : vector<8x16xi32>
    %14 = arith.extui %13 : vector<8x16xi1> to vector<8x16xi32>
    %15 = arith.sitofp %14 : vector<8x16xi32> to vector<8x16xf32>
    %cst_9 = arith.constant dense<0.000000e+00> : vector<8x8xf32>
    %16 = tpu.matmul %11, %2, %cst_9 {dimension_numbers = #tpu.dot_dimension_numbers<[1], [0], [0], [1], [0, 0, 1, 1], [], []>} : vector<8x16xf32>, vector<16x8xf32>, vector<8x8xf32> -> vector<8x8xf32>
    %17 = vector.extract_strided_slice %16 {offsets = [0, 0], sizes = [8, 4], strides = [1, 1]} : vector<8x8xf32> to vector<8x4xf32>
    %cst_10 = arith.constant dense<0.000000e+00> : vector<8x8xf32>
    %18 = tpu.matmul %15, %2, %cst_10 {dimension_numbers = #tpu.dot_dimension_numbers<[1], [0], [0], [1], [0, 0, 1, 1], [], []>} : vector<8x16xf32>, vector<16x8xf32>, vector<8x8xf32> -> vector<8x8xf32>
    %19 = vector.extract_strided_slice %18 {offsets = [0, 4], sizes = [8, 4], strides = [1, 1]} : vector<8x8xf32> to vector<8x4xf32>
    %20 = vector.shape_cast %17 : vector<8x4xf32> to vector<2x1x4x4xf32>
    %21 = vector.shape_cast %19 : vector<8x4xf32> to vector<1x2x4x4xf32>
    %22 = vector.broadcast %20 : vector<2x1x4x4xf32> to vector<2x2x4x4xf32>
    %23 = vector.broadcast %21 : vector<1x2x4x4xf32> to vector<2x2x4x4xf32>
    %24 = arith.addf %22, %23 : vector<2x2x4x4xf32>
    %cst_11 = arith.constant 0.000000e+00 : f32
    %25 = vector.broadcast %cst_11 : f32 to vector<2x2x4x4xf32>
    %26 = arith.cmpf oge, %24, %25 : vector<2x2x4x4xf32>
    %cst_12 = arith.constant 2.000000e-01 : f32
    %27 = vector.broadcast %cst_12 : f32 to vector<2x2x4x4xf32>
    %28 = arith.mulf %27, %24 : vector<2x2x4x4xf32>
    %29 = arith.select %26, %24, %28 : vector<2x2x4x4xi1>, vector<2x2x4x4xf32>
    %30 = vector.shape_cast %29 : vector<2x2x4x4xf32> to vector<4x4x4xf32>
    %cst_13 = arith.constant dense<0.000000e+00> : vector<4x4xf32>
    %31 = vector.multi_reduction <add>, %30, %cst_13 [1] : vector<4x4x4xf32> to vector<4x4xf32>
    %cst_14 = arith.constant 4.000000e+00 : f32
    %32 = vector.broadcast %cst_14 : f32 to vector<4x4xf32>
    %33 = arith.divf %31, %32 : vector<4x4xf32>
    %34 = vector.shape_cast %33 : vector<4x4xf32> to vector<2x2x4xf32>
    %cst_15 = arith.constant dense<0xFF800000> : vector<2x4xf32>
    %35 = vector.multi_reduction <maximumf>, %34, %cst_15 [1] : vector<2x2x4xf32> to vector<2x4xf32>
    %36 = vector.shape_cast %35 : vector<2x4xf32> to vector<2x1x4xf32>
    %37 = vector.broadcast %36 : vector<2x1x4xf32> to vector<2x2x4xf32>
    %38 = arith.subf %34, %37 : vector<2x2x4xf32>
    %39 = math.exp %38 : vector<2x2x4xf32>
    %cst_16 = arith.constant dense<0.000000e+00> : vector<2x4xf32>
    %40 = vector.multi_reduction <add>, %39, %cst_16 [1] : vector<2x2x4xf32> to vector<2x4xf32>
    %41 = vector.shape_cast %40 : vector<2x4xf32> to vector<2x1x4xf32>
    %42 = tpu.reciprocal %41 {approx = true} : vector<2x1x4xf32> -> vector<2x1x4xf32>
    %43 = vector.broadcast %42 : vector<2x1x4xf32> to vector<2x2x4xf32>
    %44 = arith.mulf %39, %43 : vector<2x2x4xf32>
    %c0_17 = arith.constant 0 : index
    %c0_18 = arith.constant 0 : index
    %c0_19 = arith.constant 0 : index
    %c0_20 = arith.constant 0 : index
    %45 = vector.load %arg5[%c0_17, %c0_18, %c0_19, %c0_20] : memref<1x2x2x4xf32, #tpu.memory_space<vmem>>, vector<1x2x2x4xf32>
    %46 = vector.shape_cast %45 : vector<1x2x2x4xf32> to vector<2x2x4xf32>
    %47 = vector.shape_cast %44 : vector<2x2x4xf32> to vector<1x2x2x4xf32>
    tpu.vector_store %arg5[%c0_17, %c0_18, %c0_19, %c0_20], %47 {strides = array<i32>} : memref<1x2x2x4xf32, #tpu.memory_space<vmem>>, vector<1x2x2x4xf32>,
    return
  }
  func.func @transform_0(%arg0: i32) -> (i32, i32) {
    %c0_i32 = arith.constant 0 : i32
    %c0_i32_0 = arith.constant 0 : i32
    %c0_i32_1 = arith.constant 0 : i32
    return %c0_i32, %c0_i32_0 : i32, i32
  }
  func.func @transform_1(%arg0: i32) -> (i32, i32) {
    %c0_i32 = arith.constant 0 : i32
    %c0_i32_0 = arith.constant 0 : i32
    %c0_i32_1 = arith.constant 0 : i32
    return %c0_i32, %c0_i32_0 : i32, i32
  }
  func.func @transform_2(%arg0: i32) -> (i32, i32, i32) {
    %c0_i32 = arith.constant 0 : i32
    %c0_i32_0 = arith.constant 0 : i32
    %c0_i32_1 = arith.constant 0 : i32
    return %arg0, %c0_i32, %c0_i32_0 : i32, i32, i32
  }
  func.func @transform_3(%arg0: i32) -> (i32, i32, i32) {
    %c0_i32 = arith.constant 0 : i32
    %c0_i32_0 = arith.constant 0 : i32
    %c0_i32_1 = arith.constant 0 : i32
    return %arg0, %c0_i32, %c0_i32_0 : i32, i32, i32
  }
  func.func @transform_4(%arg0: i32) -> (i32, i32, i32, i32) {
    %c0_i32 = arith.constant 0 : i32
    %c0_i32_0 = arith.constant 0 : i32
    %c0_i32_1 = arith.constant 0 : i32
    %c0_i32_2 = arith.constant 0 : i32
    return %arg0, %c0_i32, %c0_i32_0, %c0_i32_1 : i32, i32, i32, i32
  }
}

</mosaic_0001>

<bundles_post_ra>
// kernel: tpu_custom_call.1
= control target key start
LH: loop header
LB: loop body
LE: loop exit
PB: predicated region body
PF: predicated region fallthrough
CT: control target
= control target key end

     0   :  { %9 = vsyncpa [#allocation3], 0  ;;  %s1049_s0 = inlined_call_operand.vmem [shape: f32[16,32], index: 0, kind: input, shape index: {}]   ;;  %s1050_s1 = inlined_call_operand.vmem [shape: f32[32,8], index: 1, kind: input, shape index: {}]   ;;  %s1051_s2 = inlined_call_operand.vmem [shape: s32[2,8,1], index: 2, kind: input, shape index: {}]   ;;  %s1052_s3 = inlined_call_operand.vmem [shape: s32[2,8,1], index: 3, kind: input, shape index: {}]   ;;  %s1053_s4 = inlined_call_operand.hbm [shape: f32[2,2,2,4], index: 4, kind: output, shape index: {}]  }
   0x1   :  { %11 = vsyncpa [#allocation3 + $0x1], 0  ;;  %s907_s15 = smov 0   ;;  %s909_s16 = smov 0  }
   0x2   :  { %s911_s17 = smov 0   ;;  %s913_s18 = smov 0  }
   0x3 LB: > { %s928_s19 = sadd.s32 4294967295, %s872_s18   ;;  %s681_s20 = sadd.s32 4294967294, %s872_s18   ;;  %s872_s18 = sphi %s913_s18, %s1059_s18   ;;  %s868_s17 = sphi %s911_s17, %s1058_s17   ;;  %s864_s16 = sphi %s909_s16, %s1057_s16   ;;  %s860_s15 = sphi %s907_s15, %s1056_s15  }
   0x4   : > { %s932_s21 = sadd.s32 1, %s872_s18   ;;  %s118_s22 = sadd.s32 1, %s868_s17 }
   0x5   : > { %s115_s23 = ssub.s32 %s872_s18, %s932_s21  ;;  %p128_p0 = scmp.ne.s32.totalorder %s868_s17, %s864_s16 }
   0x6   : > { %p116_p1 = scmp.eq.s32.totalorder %s115_s23, 0  ;;  %p129_p2 = scmp.eq.s32.totalorder %s928_s19, 1 }
   0x7   : > { %p134_p3 = scmp.ne.s32.totalorder %s864_s16, %s860_s15  ;;  %p135_p4 = scmp.eq.s32.totalorder %s681_s20, 1 }
   0x8   : > { %s943_s24 = scalar_select %p116_p1, %s868_s17, %s118_s22  }
   0x9   : > { %p945_p5 = por %p129_p2, %p128_p0  ;;  %p949_p6 = por %p135_p4, %p134_p3 }
   0xa   : > { %p684_p7 = scmp.ge.s32.totalorder %s872_s18, 1  ;;  %p173_p8 = scmp.lt.s32.totalorder %s872_s18, 3 }
   0xc   : > { %p174_p9 = pnand %p684_p7, %p173_p8 }
   0xd   : > { %v212_v0 = vld [vmem:[%s1050_s1] sm:$0xff] (!%p174_p9)  ;;  %v213_v1 = vld [vmem:[%s1050_s1 + $0x8] sm:$0xff] (!%p174_p9)  ;;  %v214_v2 = vld [vmem:[%s1050_s1 + $0x10] sm:$0xff] (!%p174_p9)  ;;  %vm216_vm0 = vcmask (!%p174_p9), 261120   ;;  %p202_p10 = scmp.lt.s32.totalorder (!%p174_p9), %s928_s19, 1  ;;  %v874_v6 = vmov (!%p174_p9), 0   ;;  %v300_v13 = vlaneseq (!%p174_p9) }
   0xe   : > { %177 = sbr.rel (%p174_p9) target bundleno = 667 (0x29b), region = 36  ;;  %v737_v3 = vpack.c.bf16 (!%p174_p9), %v213_v1, %v212_v0  ;;  %v215_v4 = vld [vmem:[%s1050_s1 + $0x18] sm:$0xff] (!%p174_p9)  ;;  %v210_v5 = vld [vmem:[%s1049_s0] sm:$0xff] (!%p174_p9)  ;;  %797 = vset.pattern.permute.xlu0 (!%p174_p9), %v874_v6  ;;  %v211_v9 = vld [vmem:[%s1049_s0 + $0x8] sm:$0xff] (!%p174_p9)  ;;  %v875_v11 = vmov (!%p174_p9), 0.0|0.0   ;;  %vm876_vm1 = vmmov (!%p174_p9), 0  }
   0xf   : > { %v741_v7 = vpack.c.bf16 (!%p174_p9), %v215_v4, %v214_v2  ;;  %720 = vmatprep.mubr.msk.f32.mxu0 (!%p174_p9), %vm216_vm0, %v210_v5  ;;  %745 = vmatprep.subr.bf16.mxu1 (!%p174_p9), %v875_v11  ;;  %v877_v12 = vmov (!%p174_p9), 0.0   ;;  %v301_v14 = vand.u32 (!%p174_p9), 127, %v300_v13  ;;  %vm314_vm3 = vcmask (!%p174_p9), 130048   ;;  %s878_s30 = smov (!%p174_p9), 124   ;;  %s199_s5 = sand.u32 (!%p174_p9), 1, %s864_s16  }
  0x10   : > { %738 = vmatprep.subr.bf16.mxu0 (!%p174_p9), %v737_v3  ;;  %727 = vmatprep.mubr.msk.f32.mxu1 (!%p174_p9), %vm876_vm1, %v877_v12  ;;  %vm488_vm5 = vcmask (!%p174_p9), 27648   ;;  %vm522_vm10 = vcmask (!%p174_p9), 31744   ;;  %vm546_vm11 = vcmask (!%p174_p9), 1041409   ;;  %vm552_vm12 = vcmask (!%p174_p9), 25600   ;;  %s685_s6 = sshll.u32 (!%p174_p9), %s199_s5, 2  ;;  %s699_s7 = sshll.u32 (!%p174_p9), %s928_s19, 6 }
  0x11   : > { %740 = vmatpush3.bf16.msra.mxu0 (!%p174_p9), %v737_v3  ;;  %s201_s8 = scalar_lea.vmem (!%p174_p9), [#allocation2], %s685_s6  ;;  %s879_s14 = smov (!%p174_p9), [#allocation2]  }
  0x12   : > { %742 = vmatprep.subr.bf16.mxu0 (!%p174_p9), %v741_v7  ;;  %s607_s9 = sshll.u32 (!%p174_p9), %s201_s8, 4  ;;  %s1003_s9 = int_to_ptr.vmem [resolvable:$true] %s607_s9 }
  0x13   : > { %s810_s13 = scalar_lea.vmem (!%p174_p9), %s1003_s9, 64 }
  0x14   : > { %p811_p11 = scmp.ne.s32.totalorder (!%p174_p9), %s1003_s9, %s810_s13 }
  0x15   : > { %s203_s11 = scalar_select %p202_p10, %s928_s19, 1  ;;  %744 = vmatpush3.bf16.msra.mxu0 %v741_v7 }
  0x16   : > { %s1008_s19 = scalar_lea.sflag [#allocation3], %s199_s5  ;;  %p812_p12 = pnand %p811_p11, %p945_p5 }
  0x17   : > { %s686_s12 = sshll.u32 %s203_s11, 3 }
  0x18   : > { %s205_s20 = scalar_lea.vmem %s1051_s2, %s686_s12  ;;  %s209_s27 = scalar_lea.vmem %s1052_s3, %s686_s12  ;;  %721 = vmatmul.mubr.msk.f32.vlgmr.msra.gmra.mrb[0].mxu0 %vm216_vm0, %v211_v9 }
  0x19   : > { %v298_v8 = vld [vmem:[%s205_s20] sm:$0xff]  ;;  %s1001_s12 = scalar_lea.hbm %s1053_s4, %s699_s7  ;;  %p813_p13 = pneg %p812_p12 }
  0x1a   : > { %303 = vperm.xlu0 %797, %v298_v8   ;;  %v299_v10 = vld [vmem:[%s209_s27] sm:$0xff]  ;;  %s814_s20 = sshll.u32 %s879_s14, 4  ;;  %s815_s20 = int_to_ptr.vmem [resolvable:$false] %s814_s20 }
  0x1b   : > { %s816_s22 = scalar_lea.vmem %s815_s20, 128  ;;  %p817_p0 = scmp.lt.s32.totalorder %s1003_s9, %s815_s20 }
  0x1c   : > { %p818_p1 = scmp.lt.s32.totalorder %s816_s22, %s810_s13 }
  0x1e   : > { %309 = vperm.xlu0 %797, %v299_v10   ;;  %p819_p2 = por %p818_p1, %p817_p0 }
  0x20   : > { %p820_p3 = pnand %p819_p2, %p813_p13 }
  0x99   : > { %v304_v15 = vpop.permute.xlu0 %303 }
  0x9a   : > { %vm305_vm2 = vcmp.eq.s32.totalorder %v301_v14, %v304_v15 }
  0x9b   : > { %v690_v19 = vsel %vm305_vm2, 1.0, %v877_v12 }
  0x9d   : > { %v310_v20 = vpop.permute.xlu0 %309 }
  0x9e   : > { %vm311_vm4 = vcmp.eq.s32.totalorder %v301_v14, %v310_v20 }
  0x9f   : > { %v691_v21 = vsel %vm311_vm4, 1.0, %v877_v12 }
  0xeb   : > { %v722_v16 = vpop.f32.mrb[0].mxu0 }
  0xec   : > { %v289_v17 = vpop.f32.mrb[1].mxu0 }
  0xed   : > { %v746_v18 = vpack.c.bf16 %v722_v16, %v289_v17 }
  0xef   : > { %747 = vmatpush3.bf16.msra.mxu1 %v746_v18 }
  0xf0   : > { %748 = vmatprep.subr.bf16.mxu1 %v875_v11 }
  0xf2   : > { %728 = vmatmul.mubr.msk.f32.vlgmr.msra.gmra.mrb[0].mxu1 %vm314_vm3, %v690_v19 }
  0xf3   : > { %750 = vmatpush3.bf16.msra.mxu1 %v746_v18  ;;  %734 = vmatprep.mubr.msk.f32.mxu1 %vm876_vm1, %v877_v12 }
  0xf6   : > { %735 = vmatmul.mubr.msk.f32.vlgmr.msra.gmra.mrb[2].mxu1 %vm314_vm3, %v691_v21 }
 0x1c5   : > { %v384_v22 = vpop.f32.mrb[0].mxu1 }
 0x1c6   : > { %v729_v23 = vpop.f32.mrb[1].mxu1  ;;  %v462_v27 = vcombine.high %v384_v22, %v384_v22 }
 0x1c9   : > { %v457_v24 = vpop.f32.mrb[2].mxu1 }
 0x1ca   : > { %466 = vrot.lane.b32.xlu1 %v457_v24, %s878_s30  ;;  %v736_v25 = vpop.f32.mrb[3].mxu1  ;;  %v465_v26 = vcombine.high %v457_v24, %v457_v24 }
 0x1ce   : > { %468 = vrot.lane.b32.xlu1 %v465_v26, %s878_s30 }
 0x23c   : > { %v467_v28 = vpop.permute.xlu1 %466 }
 0x23d   : > { %v472_v29 = vadd.f32 %v467_v28, %v384_v22  ;;  %v474_v30 = vadd.f32 %v467_v28, %v462_v27 }
 0x23f   : > { %vm476_vm6 = vcmp.ge.f32.partialorder %v472_v29, 0.0  ;;  %vm478_vm7 = vcmp.ge.f32.partialorder %v474_v30, 0.0  ;;  %v480_v31 = vmul.f32 0.2, %v472_v29  ;;  %v482_v32 = vmul.f32 0.2, %v474_v30 }
 0x240   : > { %v469_v33 = vpop.permute.xlu1 %468 }
 0x241   : > { %v484_v34 = vsel %vm476_vm6, %v472_v29, %v480_v31  ;;  %v486_v35 = vsel %vm478_vm7, %v474_v30, %v482_v32  ;;  %v473_v36 = vadd.f32 %v469_v33, %v384_v22  ;;  %v475_v37 = vadd.f32 %v469_v33, %v462_v27 }
 0x242   : > { %v489_v38 = vsel %vm488_vm5, %v484_v34, 0.0  ;;  %v503_v39 = vsel %vm488_vm5, %v486_v35, 0.0 }
 0x243   : > { %v490_v40 = vrot.slane %v489_v38, 4  ;;  %v504_v41 = vrot.slane %v503_v39, 4  ;;  %vm477_vm8 = vcmp.ge.f32.partialorder %v473_v36, 0.0  ;;  %vm479_vm9 = vcmp.ge.f32.partialorder %v475_v37, 0.0 }
 0x244   : > { %v481_v42 = vmul.f32 0.2, %v473_v36  ;;  %v483_v43 = vmul.f32 0.2, %v475_v37 }
 0x245   : > { %v491_v44 = vadd.f32 %v490_v40, %v489_v38  ;;  %v505_v45 = vadd.f32 %v504_v41, %v503_v39 }
 0x246   : > { %v485_v46 = vsel %vm477_vm8, %v473_v36, %v481_v42  ;;  %v487_v47 = vsel %vm479_vm9, %v475_v37, %v483_v43 }
 0x247   : > { %v492_v48 = vrot.slane %v491_v44, 2  ;;  %v506_v49 = vrot.slane %v505_v45, 2  ;;  %v496_v50 = vsel %vm488_vm5, %v485_v46, 0.0  ;;  %v510_v51 = vsel %vm488_vm5, %v487_v47, 0.0 }
 0x248   : > { %v497_v52 = vrot.slane %v496_v50, 4  ;;  %v511_v53 = vrot.slane %v510_v51, 4  ;;  %v570_v47 = vshrl.u32 %v300_v13, 7 }
 0x249   : > { %v493_v54 = vadd.f32 %v492_v48, %v491_v44  ;;  %v507_v55 = vadd.f32 %v506_v49, %v505_v45 }
 0x24a   : > { %v498_v56 = vadd.f32 %v497_v52, %v496_v50  ;;  %v512_v57 = vadd.f32 %v511_v53, %v510_v51  ;;  %v571_v48 = vsub.s32 0, %v570_v47 }
 0x24b   : > { %v494_v58 = vrot.slane %v493_v54, 1  ;;  %v508_v59 = vrot.slane %v507_v55, 1 }
 0x24c   : > { %v499_v60 = vrot.slane %v498_v56, 2  ;;  %v513_v61 = vrot.slane %v512_v57, 2 }
 0x24d   : > { %v495_v62 = vadd.f32 %v494_v58, %v493_v54  ;;  %v509_v63 = vadd.f32 %v508_v59, %v507_v55 }
 0x24e   : > { %v500_v0 = vadd.f32 %v499_v60, %v498_v56  ;;  %v514_v1 = vadd.f32 %v513_v61, %v512_v57 }
 0x24f   : > { %v518_v4 = vmul.f32 0.25, %v495_v62  ;;  %v520_v5 = vmul.f32 0.25, %v509_v63 }
 0x250   : > { %v501_v2 = vrot.slane %v500_v0, 1  ;;  %v515_v3 = vrot.slane %v514_v1, 1 }
 0x251   : > { %v523_v10 = vsel %vm522_vm10, %v518_v4, -inf  ;;  %v526_v11 = vsel %vm522_vm10, %v520_v5, -inf }
 0x252   : > { %v502_v6 = vadd.f32 %v501_v2, %v500_v0  ;;  %v516_v7 = vadd.f32 %v515_v3, %v514_v1 }
 0x254   : > { %v519_v8 = vmul.f32 0.25, %v502_v6  ;;  %v521_v9 = vmul.f32 0.25, %v516_v7 }
 0x256   : > { %v524_v12 = vsel %vm522_vm10, %v519_v8, -inf  ;;  %v527_v14 = vsel %vm522_vm10, %v521_v9, -inf }
 0x257   : > { %v525_v15 = vmax.f32 %v523_v10, %v524_v12  ;;  %v528_v16 = vmax.f32 %v526_v11, %v527_v14 }
 0x259   : > { %v529_v17 = vsub.f32 %v518_v4, %v525_v15  ;;  %v530_v18 = vsub.f32 %v519_v8, %v525_v15  ;;  %v532_v19 = vsub.f32 %v521_v9, %v528_v16  ;;  %v531_v20 = vsub.f32 %v520_v5, %v528_v16 }
 0x25b   : > { %v533_v21 = vmul.f32 1.442695, %v529_v17  ;;  %v535_v22 = vmul.f32 1.442695, %v530_v18  ;;  %v539_v23 = vmul.f32 1.442695, %v532_v19 }
 0x25c   : > { %v537_v24 = vmul.f32 1.442695, %v531_v20 }
 0x25d   : > { %798 = vpow2.f32 %v535_v22 }
 0x25e   : > { %800 = vpow2.f32 %v533_v21 }
 0x25f   : > { %802 = vpow2.f32 %v539_v23 }
 0x260   : > { %804 = vpow2.f32 %v537_v24 }
 0x267   : > { %v799_v25 = vpop.eup %798 }
 0x268   : > { %v801_v26 = vpop.eup %800  ;;  %v545_v27 = vrot.slane %v799_v25, 7 }
 0x269   : > { %v803_v28 = vpop.eup %802 }
 0x26a   : > { %v547_v29 = vsel %vm546_vm11, %v545_v27, %v801_v26  ;;  %v548_v30 = vrot.slane %v803_v28, 7  ;;  %v805_v31 = vpop.eup %804 }
 0x26b   : > { %v553_v32 = vsel %vm552_vm12, %v547_v29, 0.0 }
 0x26c   : > { %v549_v33 = vsel %vm546_vm11, %v548_v30, %v805_v31  ;;  %v554_v34 = vrot.slane %v553_v32, 4 }
 0x26d   : > { %v560_v35 = vsel %vm552_vm12, %v549_v33, 0.0 }
 0x26e   : > { %v555_v36 = vadd.f32 %v554_v34, %v553_v32  ;;  %v561_v37 = vrot.slane %v560_v35, 4 }
 0x270   : > { %v556_v38 = vrot.slane %v555_v36, 2  ;;  %v562_v39 = vadd.f32 %v561_v37, %v560_v35 }
 0x272   : > { %v557_v40 = vadd.f32 %v556_v38, %v555_v36  ;;  %v563_v41 = vrot.slane %v562_v39, 2 }
 0x274   : > { %v558_v42 = vrot.slane %v557_v40, 1  ;;  %v564_v43 = vadd.f32 %v563_v41, %v562_v39 }
 0x276   : > { %v559_v44 = vadd.f32 %v558_v42, %v557_v40  ;;  %v565_v45 = vrot.slane %v564_v43, 1 }
 0x278   : > { %v566_v46 = vadd.f32 %v565_v45, %v564_v43  ;;  %806 = vrcp.f32 %v559_v44 }
 0x27a   : > { %808 = vrcp.f32 %v566_v46 }
 0x282   : > { %v807_v49 = vpop.eup %806 }
 0x283   : > { %v572_v50 = vrot.slane %v807_v49, %v571_v48 }
 0x284   : > { %v809_v51 = vpop.eup %808 }
 0x285   : > { %v576_v52 = vrot.slane %v809_v51, %v571_v48  ;;  %v577_v53 = vmul.f32 %v801_v26, %v572_v50  ;;  %v578_v54 = vmul.f32 %v799_v25, %v572_v50 }
 0x287   : > { %v579_v55 = vmul.f32 %v805_v31, %v576_v52  ;;  %v580_v56 = vmul.f32 %v803_v28, %v576_v52  ;;  %v585_v57 = vrot.slane %v578_v54, 7 }
 0x289   : > { %v586_v58 = vsel %vm546_vm11, %v585_v57, %v577_v53  ;;  %v587_v59 = vrot.slane %v580_v56, 7 }
 0x28a   : > { %591 = vst.msk [vmem:[%s201_s8] sm:$0x3] %vm552_vm12, %v586_v58 }
 0x28b   : > { %v588_v13 = vsel %vm546_vm11, %v587_v59, %v579_v55 }
 0x28c   : > { %592 = vst.msk [vmem:[%s201_s8 + $0x2] sm:$0x3] %vm552_vm12, %v588_v13 }
 0x28d   : > { %823 = shalt.err (!%p820_p3)
}
 0x28e   : > { %s824_s23 = scalar_lea.hbm %s1001_s12, 64  ;;  %s828_s29 = scalar_lea.hbm %s1053_s4, 128 }
 0x28f   : > { %p825_p4 = scmp.ne.s32.totalorder %s1001_s12, %s824_s23  ;;  %p829_p9 = scmp.lt.u32.totalorder %s1001_s12, %s1053_s4 }
 0x290   : > { %p830_p10 = scmp.lt.u32.totalorder %s828_s29, %s824_s23  ;;  %p832_p12 = scmp.lt.u32.totalorder %s824_s23, %s1001_s12 }
 0x291   : > { %p826_p7 = pnand %p825_p4, %p945_p5 }
 0x292   : > { %p831_p11 = por %p830_p10, %p829_p9 }
 0x293   : > { %p827_p8 = pneg %p826_p7 }
 0x294   : > { %p833_p13 = por %p832_p12, %p831_p11 }
 0x296   : > { %p834_p0 = pnand %p833_p13, %p827_p8 }
 0x298   : > { %837 = shalt.err (!%p834_p0)
}
 0x299   : > { %s880_s6 = smov 32   ;;  %s881_s7 = smov 2  }
 0x29a   : > { %751 = dma.vmem_to_hbm [thread:$0]  (%p945_p5), %s1003_s9, 64, %s1001_s12, %s1008_s19, %s880_s6, %s880_s6, %s881_s7  }
 0x29b PF: > { %p757_p1 = scmp.ge.s32.totalorder %s872_s18, 2  ;;  %s622_s8 = sand.u32 1, %s860_s15  }
 0x29c   : > { %s623_s10 = scalar_lea.sflag [#allocation3], %s622_s8 }
 0x29d   : > { %p754_p2 = pnand %p757_p1, %p949_p6 }
 0x29f   : > { %855 = dma.done.wait (!%p754_p2), %s623_s10, 64  }
 0x2a0   : > { %857 = vsyncadd (!%p754_p2), %s623_s10, 4294967232  ;;  %p14_p3 = scmp.ge.s32.totalorder %s932_s21, 4   ;;  %s1056_s15 = smov %s864_s16 }
 0x2a1   : > { %s1057_s16 = smov %s868_s17  ;;  %s1058_s17 = smov %s943_s24 }
 0x2a2   : > { %s1059_s18 = smov %s932_s21  ;;  %16 = sbr.rel (!%p14_p3) target bundleno = 3 (0x3), region = 74 }
 0x2a9   :  { %628 = vsyncpa [#allocation3], 1 }
 0x2aa   :  { %630 = vsyncpa [#allocation3 + $0x1], 1 }

</bundles_post_ra>
